<compile_context>
chip_gen: v5e
topology: v5e:2x2
jax: 0.10.0
libtpu: 0.0.40
codegen_flags: <defaults>
</compile_context>

<pallas_src>
import math
import functools

import jax
import jax.numpy as jnp
from jax import lax
from jax.experimental import pallas as pl
from jax.experimental.pallas import tpu as pltpu


def _add_margin_kernel(x_ref, wt_ref, label_ref, out_ref, *, s, m, tile_c):
    # x_ref:     (tb, D)  float32  -- batch tile of input features (un-normalized)
    # wt_ref:    (D, tc)  float32  -- pre-normalized weight, transposed (lane-dense RHS)
    # label_ref: (tb, 1)  int32    -- target class id per row
    # out_ref:   (tb, tc) float32  -- scaled logits
    x = x_ref[...]

    # F.normalize(x, p=2, dim=1, eps=1e-12): x / max(||x||, 1e-12)
    #   == x * rsqrt(max(sum(x*x), 1e-24))   (rsqrt runs on the EUP slot)
    ssq = jnp.sum(x * x, axis=-1, keepdims=True)
    x_n = x * lax.rsqrt(jnp.maximum(ssq, 1e-24))

    # cosine = x_n @ w_n^T ; wt_ref already holds w_n^T -> straight MXU matmul.
    cosine = jnp.dot(x_n, wt_ref[...], preferred_element_type=jnp.float32)

    tb, tc = cosine.shape
    class_ids = pl.program_id(1) * tile_c + lax.broadcasted_iota(jnp.int32, (tb, tc), 1)

    logits = s * cosine
    # s * (one_hot * (cos - m) + (1 - one_hot) * cos)  ==  logits - s*m at the label column.
    out_ref[...] = jnp.where(class_ids == label_ref[...], logits - s * m, logits)


def _round_up(n, k):
    return ((n + k - 1) // k) * k


def add_margin_product(x, weight, label, *, s=30.0, m=0.4, tile_b=128, tile_c=256):
    """x: (B, D) float; weight: (C, D) float; label: (B,) int; -> (B, C) float32."""
    B, D = x.shape
    C, D2 = weight.shape
    assert D == D2

    x = x.astype(jnp.float32)
    weight = weight.astype(jnp.float32)

    # Pre-normalize weight rows once in XLA (reused for every batch row), store as
    # (D, C) so the kernel's RHS tile is lane-dense and needs no transpose.
    w_ssq = jnp.sum(weight * weight, axis=1, keepdims=True)
    w_n = weight * lax.rsqrt(jnp.maximum(w_ssq, 1e-24))
    wt = w_n.T  # (D, C)

    # Clamp tiles for small problems, then pad to tile multiples (zero padding is
    # harmless: padded rows/cols are sliced off before returning).
    tb = min(int(tile_b), _round_up(B, 8))
    tc = min(int(tile_c), _round_up(C, 128))
    B_pad = _round_up(B, tb)
    C_pad = _round_up(C, tc)

    if B_pad != B:
        x = jnp.pad(x, ((0, B_pad - B), (0, 0)))
    if C_pad != C:
        wt = jnp.pad(wt, ((0, 0), (0, C_pad - C)))

    label2d = label.reshape(-1, 1).astype(jnp.int32)
    if B_pad != B:
        # -1 never matches a valid class id; padded rows are discarded anyway.
        label2d = jnp.pad(label2d, ((0, B_pad - B), (0, 0)), constant_values=-1)

    kernel = functools.partial(_add_margin_kernel, s=float(s), m=float(m), tile_c=tc)
    grid = (B_pad // tb, C_pad // tc)

    # Double-buffered f32 tiles; clamp below v7x's 64 MiB physical VMEM.
    est_vmem = 2 * 4 * (tb * D + D * tc + tb * tc + tb) + (2 << 20)
    vmem_limit = int(min(max(est_vmem, 32 << 20), 60 << 20))

    out = pl.pallas_call(
        kernel,
        out_shape=jax.ShapeDtypeStruct((B_pad, C_pad), jnp.float32),
        grid_spec=pltpu.PrefetchScalarGridSpec(
            num_scalar_prefetch=0,
            grid=grid,
            in_specs=[
                pl.BlockSpec((tb, D), lambda i, j: (i, 0)),   # input rows
                pl.BlockSpec((D, tc), lambda i, j: (0, j)),   # normalized weight^T cols
                pl.BlockSpec((tb, 1), lambda i, j: (i, 0)),   # labels
            ],
            out_specs=pl.BlockSpec((tb, tc), lambda i, j: (i, j)),
        ),
        compiler_params=pltpu.CompilerParams(
            dimension_semantics=("parallel", "parallel"),
            vmem_limit_bytes=vmem_limit,
        ),
    )(x, wt, label2d)

    return out[:B, :C]


def _reference(x, weight, label, s=30.0, m=0.4):
    eps = 1e-12
    x_n = x / jnp.maximum(jnp.linalg.norm(x, axis=1, keepdims=True), eps)
    w_n = weight / jnp.maximum(jnp.linalg.norm(weight, axis=1, keepdims=True), eps)
    cosine = x_n @ w_n.T
    one_hot = jax.nn.one_hot(label, weight.shape[0], dtype=jnp.float32)
    return s * (one_hot * (cosine - m) + (1.0 - one_hot) * cosine)


def _run_case(key, batch, in_features, out_features, s_val, m_val):
    kx, kw, kl = jax.random.split(key, 3)
    bound = math.sqrt(6.0 / (in_features + out_features))  # Xavier-uniform init
    weight = jax.random.uniform(
        kw, (out_features, in_features), minval=-bound, maxval=bound, dtype=jnp.float32
    )
    x = jax.random.normal(kx, (batch, in_features), dtype=jnp.float32)
    label = jax.random.randint(kl, (batch,), 0, out_features, dtype=jnp.int32)

    out = add_margin_product(x, weight, label, s=s_val, m=m_val)
    out = jax.block_until_ready(out)

    ref = _reference(x, weight, label, s=s_val, m=m_val)
    assert out.shape == (batch, out_features)
    err = float(jnp.max(jnp.abs(out - ref)))
    assert jnp.allclose(out, ref, atol=2e-4, rtol=2e-4), err
    return err


if __name__ == "__main__":
    s_val, m_val = 30.0, 0.4
    key = jax.random.PRNGKey(0)
    k1, k2 = jax.random.split(key)

    # Tile-aligned small case (module-consistent shapes).
    _run_case(k1, batch=8, in_features=64, out_features=128, s_val=s_val, m_val=m_val)
    # Non-aligned case exercising the padding / remainder path.
    _run_case(k2, batch=5, in_features=96, out_features=200, s_val=s_val, m_val=m_val)

    print("KERNEL_OK")
</pallas_src>

<mosaic_0001>
module attributes {stable_mosaic.version = 11 : i64} {
  func.func @_add_margin_kernel(%arg0: i32, %arg1: i32, %arg2: memref<8x64xf32, #tpu.memory_space<vmem>>, %arg3: memref<64x128xf32, #tpu.memory_space<vmem>>, %arg4: memref<8x1xi32, #tpu.memory_space<vmem>>, %arg5: memref<8x128xf32, #tpu.memory_space<vmem>>) attributes {dimension_semantics = [#tpu.dimension_semantics<parallel>, #tpu.dimension_semantics<parallel>], iteration_bounds = array<i64: 1, 1>, scalar_prefetch = 0 : i64, scratch_operands = 0 : i64, tpu.core_type = #tpu.core_type<tc>, window_params = [{transform_indices = @transform_0, window_bounds = array<i64: 8, 64>}, {transform_indices = @transform_1, window_bounds = array<i64: 64, 128>}, {transform_indices = @transform_2, window_bounds = array<i64: 8, 1>}, {transform_indices = @transform_3, window_bounds = array<i64: 8, 128>}]} {
    %c0 = arith.constant 0 : index
    %c0_0 = arith.constant 0 : index
    %0 = vector.load %arg2[%c0, %c0_0] : memref<8x64xf32, #tpu.memory_space<vmem>>, vector<8x64xf32>
    %1 = arith.mulf %0, %0 : vector<8x64xf32>
    %cst = arith.constant dense<0.000000e+00> : vector<8xf32>
    %2 = vector.multi_reduction <add>, %1, %cst [1] : vector<8x64xf32> to vector<8xf32>
    %3 = vector.shape_cast %2 : vector<8xf32> to vector<8x1xf32>
    %cst_1 = arith.constant 1.000000e-24 : f32
    %4 = vector.broadcast %cst_1 : f32 to vector<8x1xf32>
    %5 = arith.maximumf %3, %4 : vector<8x1xf32>
    %6 = math.rsqrt %5 : vector<8x1xf32>
    %7 = vector.broadcast %6 : vector<8x1xf32> to vector<8x64xf32>
    %8 = arith.mulf %0, %7 : vector<8x64xf32>
    %c0_2 = arith.constant 0 : index
    %c0_3 = arith.constant 0 : index
    %9 = vector.load %arg3[%c0_2, %c0_3] : memref<64x128xf32, #tpu.memory_space<vmem>>, vector<64x128xf32>
    %cst_4 = arith.constant dense<0.000000e+00> : vector<8x128xf32>
    %10 = tpu.matmul %8, %9, %cst_4 {dimension_numbers = #tpu.dot_dimension_numbers<[1], [0], [0], [1], [0, 0, 1, 1], [], []>} : vector<8x64xf32>, vector<64x128xf32>, vector<8x128xf32> -> vector<8x128xf32>
    %c128_i32 = arith.constant 128 : i32
    %11 = arith.muli %arg1, %c128_i32 : i32
    %12 = tpu.iota {dimensions = array<i32: 1>} : vector<8x128xi32>
    %13 = vector.broadcast %11 : i32 to vector<8x128xi32>
    %14 = arith.addi %13, %12 : vector<8x128xi32>
    %cst_5 = arith.constant 3.000000e+01 : f32
    %15 = vector.broadcast %cst_5 : f32 to vector<8x128xf32>
    %16 = arith.mulf %15, %10 : vector<8x128xf32>
    %c0_6 = arith.constant 0 : index
    %c0_7 = arith.constant 0 : index
    %17 = vector.load %arg4[%c0_6, %c0_7] : memref<8x1xi32, #tpu.memory_space<vmem>>, vector<8x1xi32>
    %18 = vector.broadcast %17 : vector<8x1xi32> to vector<8x128xi32>
    %19 = arith.cmpi eq, %14, %18 : vector<8x128xi32>
    %cst_8 = arith.constant 1.200000e+01 : f32
    %20 = vector.broadcast %cst_8 : f32 to vector<8x128xf32>
    %21 = arith.subf %16, %20 : vector<8x128xf32>
    %22 = arith.select %19, %21, %16 : vector<8x128xi1>, vector<8x128xf32>
    %c0_9 = arith.constant 0 : index
    %c0_10 = arith.constant 0 : index
    %23 = vector.load %arg5[%c0_9, %c0_10] : memref<8x128xf32, #tpu.memory_space<vmem>>, vector<8x128xf32>
    tpu.vector_store %arg5[%c0_9, %c0_10], %22 {strides = array<i32>} : memref<8x128xf32, #tpu.memory_space<vmem>>, vector<8x128xf32>,
    return
  }
  func.func @transform_0(%arg0: i32, %arg1: i32) -> (i32, i32) {
    %c0_i32 = arith.constant 0 : i32
    %c0_i32_0 = arith.constant 0 : i32
    return %arg0, %c0_i32 : i32, i32
  }
  func.func @transform_1(%arg0: i32, %arg1: i32) -> (i32, i32) {
    %c0_i32 = arith.constant 0 : i32
    %c0_i32_0 = arith.constant 0 : i32
    return %c0_i32, %arg1 : i32, i32
  }
  func.func @transform_2(%arg0: i32, %arg1: i32) -> (i32, i32) {
    %c0_i32 = arith.constant 0 : i32
    %c0_i32_0 = arith.constant 0 : i32
    return %arg0, %c0_i32 : i32, i32
  }
  func.func @transform_3(%arg0: i32, %arg1: i32) -> (i32, i32) {
    %c0_i32 = arith.constant 0 : i32
    return %arg0, %arg1 : i32, i32
  }
}

</mosaic_0001>

<bundles_post_ra>
// kernel: tpu_custom_call.1
= control target key start
LH: loop header
LB: loop body
LE: loop exit
PB: predicated region body
PF: predicated region fallthrough
CT: control target
= control target key end

     0   :  { %8 = vsyncpa [#allocation3], 0  ;;  %s212_s0 = inlined_call_operand.vmem [shape: f32[8,64], index: 0, kind: input, shape index: {}]   ;;  %s213_s1 = inlined_call_operand.hbm [shape: f32[64,128], index: 1, kind: input, shape index: {}]   ;;  %s214_s2 = inlined_call_operand.vmem [shape: s32[8,1], index: 2, kind: input, shape index: {}]   ;;  %s215_s3 = inlined_call_operand.hbm [shape: f32[8,128], index: 3, kind: output, shape index: {}]  }
   0x1   :  { %9 = vsyncpa [#allocation4], 0  ;;  %s16_s14 = sshll.u32 %s213_s1, 4  ;;  %s173_s15 = smov [#allocation2]   ;;  %s17_s14 = int_to_ptr.hbm [resolvable:$true] %s16_s14 }
   0x2   :  { %s18_s16 = sshll.u32 %s173_s15, 4  ;;  %s174_s17 = smov 128   ;;  %s19_s16 = int_to_ptr.vmem [resolvable:$true] %s18_s16 }
   0x3   :  { %s175_s18 = smov 8  }
   0x4   :  { %24 = dma.hbm_to_vmem [thread:$0]  %s17_s14, 1024, %s19_s16, [#allocation3], %s174_s17, %s174_s17, %s175_s18  }
   0x5   :  { %169 = dma.done.wait [#allocation3], 1024  }
   0x6   :  { %170 = vsyncadd [#allocation3], 4294966272  ;;  %v31_v0 = vld [vmem:[%s212_s0] sm:$0xff]  ;;  %vm33_vm0 = vcmask 523264   ;;  %v56_v3 = vld [vmem:[#allocation2 + $0x38] sm:$0xff]  ;;  %v176_v12 = vmov 0   ;;  %v81_v23 = vlaneseq }
   0x7   :  { %v32_v1 = vmul.f32 %v31_v0, %v31_v0  ;;  %68 = vmatpush.msra.mxu0 %v56_v3  ;;  %v55_v4 = vld [vmem:[#allocation2 + $0x30] sm:$0xff]  ;;  %v54_v5 = vld [vmem:[#allocation2 + $0x28] sm:$0xff]  ;;  %v53_v6 = vld [vmem:[#allocation2 + $0x20] sm:$0xff]  ;;  %118 = vset.pattern.permute.xlu0 %v176_v12  ;;  %s101_s24 = sshll.u32 %s215_s3, 4  ;;  %s102_s24 = int_to_ptr.hbm [resolvable:$true] %s101_s24 }
   0x8   :  { %v52_v7 = vld [vmem:[#allocation2 + $0x18] sm:$0xff]  ;;  %v51_v8 = vld [vmem:[#allocation2 + $0x10] sm:$0xff]  ;;  %v50_v9 = vld [vmem:[#allocation2 + $0x8] sm:$0xff]  ;;  %v82_v24 = vand.u32 127, %v81_v23 }
   0x9   :  { %v34_v2 = vsel %vm33_vm0, %v32_v1, 0.0  ;;  %69 = vmatpush.msra.mxu0 %v55_v4  ;;  %v49_v10 = vld [vmem:[#allocation2] sm:$0xff] }
   0xa   :  { %35 = vadd.xlane.f32.xlu0 %v34_v2  ;;  %v86_v11 = vld [vmem:[%s214_s2] sm:$0xff]  ;;  %s177_s2 = smov [#allocation5]  }
   0xb   :  { %70 = vmatpush.msra.mxu0 %v54_v5  ;;  %s99_s21 = sshll.u32 %s177_s2, 4  ;;  %s100_s21 = int_to_ptr.vmem [resolvable:$true] %s99_s21 }
   0xd   :  { %71 = vmatpush.msra.mxu0 %v53_v6 }
   0xf   :  { %72 = vmatpush.msra.mxu0 %v52_v7 }
  0x11   :  { %73 = vmatpush.msra.mxu0 %v51_v8 }
  0x13   :  { %74 = vmatpush.msra.mxu0 %v50_v9 }
  0x15   :  { %75 = vmatpush.msra.mxu0 %v49_v10 }
  0x1e   :  { %88 = vperm.xlu0 %118, %v86_v11  }
  0x7d   :  { %v36_v13 = vpop.xlane.xlu0 %35 }
  0x7e   :  { %v37_v14 = vmax.f32 %v36_v13, 1e-24 }
  0x80   :  { %119 = vrsqrt.f32 %v37_v14  ;;  %vm44_vm2 = vweird.f32 %v37_v14 }
  0x86   :  { %v120_v15 = vpop.eup %119 }
  0x87   :  { %v39_v16 = vmul.f32 %v120_v15, %v37_v14  ;;  %vm45_vm1 = vweird.f32 %v120_v15 }
  0x88   :  { %vm46_vm3 = vmor %vm44_vm2, %vm45_vm1 }
  0x89   :  { %v40_v17 = vmul.f32 %v120_v15, %v39_v16 }
  0x8b   :  { %v41_v18 = vmul.f32 0.5, %v40_v17 }
  0x8d   :  { %v42_v19 = vsub.f32 1.5, %v41_v18 }
  0x8f   :  { %v43_v20 = vmul.f32 %v120_v15, %v42_v19 }
  0x90   :  { %v89_v25 = vpop.permute.xlu0 %88 }
  0x91   :  { %v47_v21 = vsel %vm46_vm3, %v120_v15, %v43_v20  ;;  %vm90_vm4 = vcmp.eq.s32.totalorder %v82_v24, %v89_v25 }
  0x92   :  { %v48_v22 = vmul.f32 %v47_v21, %v31_v0 }
  0x94   :  { %111 = vmatmul.msk.f32.vlgmr.msra.gmra.mxu0 %vm33_vm0, %v48_v22 }
 0x111   :  { %v77_v26 = vpop.f32.mrf.mxu0 }
 0x112   :  { %v85_v27 = vmul.f32 30.0, %v77_v26 }
 0x114   :  { %v112_v28 = vadd.f32 -12.0, %v85_v27 }
 0x116   :  { %v92_v29 = vsel %vm90_vm4, %v112_v28, %v85_v27 }
 0x117   :  { %93 = vst [vmem:[#allocation5] sm:$0xff] %v92_v29 }
 0x118   :  { %104 = dma.vmem_to_hbm [thread:$0]  %s100_s21, 128, %s102_s24, [#allocation4]  }
 0x119   :  { %171 = dma.done.wait [#allocation4], 128  }
 0x11a   :  { %172 = vsyncadd [#allocation4], 4294967168 }
 0x11b   :  { %109 = vsyncpa [#allocation3], 1 }
 0x11c   :  { %110 = vsyncpa [#allocation4], 1 }

</bundles_post_ra>
